<compile_context>
chip_gen: v7x
topology: tpu7x:2x2x1
jax: 0.10.0
libtpu: 0.0.40
codegen_flags: <defaults>
</compile_context>

<pallas_src>
import functools

import jax
import jax.numpy as jnp
from jax.experimental import pallas as pl
from jax.experimental.pallas import tpu as pltpu


LANE = 128
SUBLANE = 8
OUT_LANES = 128          # lane-dense output slab width


def _round_up(x: int, m: int) -> int:
    return (x + m - 1) // m * m


# -----------------------------------------------------------------------------
# Kernel
# -----------------------------------------------------------------------------
def _make_kernel(*, num_fields, embed_dim, num_layers, tile_b,
                 compute_dtype, negative_slope=0.01):
    """Fused embeddings + MLP + wide/deep head for one batch tile."""
    F, E, L = num_fields, embed_dim, num_layers

    def _act(h, i):
        # PyTorch: layer 0 and all middle layers -> LeakyReLU(0.01);
        # last layer -> Tanh (only if there is more than one layer).
        if i == L - 1 and L > 1:
            return jnp.tanh(h)
        return jnp.where(h > 0, h, negative_slope * h)

    def kernel(x_cat_ref, x_num_ref, *rest):
        out_ref = rest[-1]
        refs = rest[:-1]
        tables = refs[:F]
        w_refs = refs[F:F + 2 * L]
        wp_deep_ref, wp_num_ref, bp_ref = refs[F + 2 * L:]

        # ---- layer 0: embedding lookup fused into the first Linear ----------
        # concat(emb_0..emb_{F-1}) @ W0  ==  sum_f emb_f @ W0[f*E:(f+1)*E, :]
        w0_ref = w_refs[0]
        b0 = w_refs[1][...]                                   # (1, H0p) f32
        h0p = w0_ref.shape[1]
        acc = jnp.zeros((tile_b, h0p), jnp.float32)
        for f in range(F):
            ncat = tables[f].shape[0]                         # padded n_cat
            ids = x_cat_ref[:, f:f + 1]                       # (tile_b, 1) i32
            iota = jax.lax.broadcasted_iota(jnp.int32, (tile_b, ncat), 1)
            onehot = (ids == iota).astype(jnp.float32)        # (tile_b, ncat)
            emb_f = jnp.dot(onehot, tables[f][...],
                            preferred_element_type=jnp.float32)   # (tile_b, E)
            acc = acc + jnp.dot(
                emb_f.astype(compute_dtype),
                w0_ref[f * E:(f + 1) * E, :].astype(compute_dtype),
                preferred_element_type=jnp.float32)
        h = _act(acc + b0, 0)                                 # f32 elementwise

        # ---- remaining DNN layers -------------------------------------------
        for i in range(1, L):
            w = w_refs[2 * i][...].astype(compute_dtype)
            b = w_refs[2 * i + 1][...]                        # (1, Hip) f32
            h = jnp.dot(h.astype(compute_dtype), w,
                        preferred_element_type=jnp.float32) + b
            h = _act(h, i)

        # ---- prediction head: VPU multiply + lane reduce (no N=1 matmul) ----
        logit = (jnp.sum(h * wp_deep_ref[...], axis=-1, keepdims=True)
                 + jnp.sum(x_num_ref[...] * wp_num_ref[...], axis=-1,
                           keepdims=True)
                 + bp_ref[...])                               # (tile_b, 1)
        prob = jax.nn.sigmoid(logit)

        # Lane-dense output slab; column 0 is sliced out in the wrapper.
        out_ref[...] = jnp.broadcast_to(prob, (tile_b, OUT_LANES))

    return kernel


# -----------------------------------------------------------------------------
# Parameters
# -----------------------------------------------------------------------------
def init_params(key, n_numeric_features, categorical_features,
                dnn_layer_sizes, embedding_dim=32):
    """PyTorch-faithful parameter shapes (used by the reference)."""
    params = {}
    keys = jax.random.split(key, len(categorical_features)
                            + 2 * len(dnn_layer_sizes) + 2)
    ki = 0

    tables = []
    for n_cat in categorical_features:
        tables.append(jax.random.normal(keys[ki], (n_cat, embedding_dim),
                                        dtype=jnp.float32))
        ki += 1
    params["embedding_tables"] = tables

    dnn_indim = len(categorical_features) * embedding_dim
    sizes = [dnn_indim] + list(dnn_layer_sizes)
    dnn_w, dnn_b = [], []
    for i in range(len(dnn_layer_sizes)):
        bound = 1.0 / float(jnp.sqrt(sizes[i]))
        dnn_w.append(jax.random.uniform(keys[ki], (sizes[i], sizes[i + 1]),
                                        minval=-bound, maxval=bound,
                                        dtype=jnp.float32))
        ki += 1
        dnn_b.append(jax.random.uniform(keys[ki], (1, sizes[i + 1]),
                                        minval=-bound, maxval=bound,
                                        dtype=jnp.float32))
        ki += 1
    params["dnn_w"] = dnn_w
    params["dnn_b"] = dnn_b

    pred_in = dnn_layer_sizes[-1] + n_numeric_features
    bound = 1.0 / float(jnp.sqrt(pred_in))
    wp = jax.random.uniform(keys[ki], (pred_in, 1),
                            minval=-bound, maxval=bound, dtype=jnp.float32)
    ki += 1
    bp = jax.random.uniform(keys[ki], (1, 1),
                            minval=-bound, maxval=bound, dtype=jnp.float32)
    params["wp_deep"] = wp[:dnn_layer_sizes[-1], :]
    params["wp_num"] = wp[dnn_layer_sizes[-1]:, :]
    params["bp"] = bp
    return params


def pack_params(params):
    """One-time re-layout: pad hidden widths to multiples of 128 (lane-dense),
    pad table rows to multiples of 8, and transpose the prediction weights to
    row vectors for the VPU head. All padding is with zeros => exact."""
    tables = params["embedding_tables"]
    packed_tables = []
    for t in tables:
        pad_rows = _round_up(t.shape[0], SUBLANE) - t.shape[0]
        packed_tables.append(jnp.pad(t, ((0, pad_rows), (0, 0))))

    dnn_w, dnn_b = params["dnn_w"], params["dnn_b"]
    pw, pb = [], []
    prev_pad_out = dnn_w[0].shape[0]           # layer-0 in-dim = F*E (exact)
    for w, b in zip(dnn_w, dnn_b):
        true_in, true_out = w.shape
        pad_out = _round_up(true_out, LANE)
        pw.append(jnp.pad(w, ((0, prev_pad_out - true_in),
                              (0, pad_out - true_out))))
        pb.append(jnp.pad(b, ((0, 0), (0, pad_out - true_out))))
        prev_pad_out = pad_out

    h_last = params["wp_deep"].shape[0]
    wp_deep_row = jnp.pad(params["wp_deep"].T,
                          ((0, 0), (0, prev_pad_out - h_last)))   # (1, Hp)
    wp_num_row = params["wp_num"].T                               # (1, n_num)
    return {"tables": packed_tables, "dnn_w": pw, "dnn_b": pb,
            "wp_deep_row": wp_deep_row, "wp_num_row": wp_num_row,
            "bp": params["bp"]}


# -----------------------------------------------------------------------------
# Wrapper
# -----------------------------------------------------------------------------
@functools.partial(jax.jit, static_argnames=("compute_dtype", "tile_b_max"))
def wide_and_deep_forward(x_numerical, x_categorical, packed,
                          compute_dtype=jnp.bfloat16, tile_b_max=256):
    B, n_num = x_numerical.shape
    F = x_categorical.shape[1]
    tables = packed["tables"]
    dnn_w, dnn_b = packed["dnn_w"], packed["dnn_b"]
    L = len(dnn_w)
    E = dnn_w[0].shape[0] // F

    x_categorical = x_categorical.astype(jnp.int32)

    # Batch tiling (multiple of 8 sublanes); pad rows with zeros (index 0 is a
    # valid category, padded rows are sliced off at the end).
    tile_b = min(tile_b_max, _round_up(B, SUBLANE))
    padded_b = _round_up(B, tile_b)
    if padded_b != B:
        x_numerical = jnp.pad(x_numerical, ((0, padded_b - B), (0, 0)))
        x_categorical = jnp.pad(x_categorical, ((0, padded_b - B), (0, 0)))
    grid = (padded_b // tile_b,)

    kernel = _make_kernel(num_fields=F, embed_dim=E, num_layers=L,
                          tile_b=tile_b, compute_dtype=compute_dtype)

    def row_spec(cols):
        return pl.BlockSpec((tile_b, cols), lambda i: (i, 0))

    def resident(arr):
        return pl.BlockSpec(arr.shape, lambda i: (0, 0))

    flat = []
    specs = [row_spec(F), row_spec(n_num)]
    for t in tables:
        flat.append(t)
        specs.append(resident(t))
    for w, b in zip(dnn_w, dnn_b):
        flat += [w, b]
        specs += [resident(w), resident(b)]
    flat += [packed["wp_deep_row"], packed["wp_num_row"], packed["bp"]]
    specs += [resident(packed["wp_deep_row"]),
              resident(packed["wp_num_row"]),
              resident(packed["bp"])]

    out = pl.pallas_call(
        kernel,
        grid=grid,
        out_shape=jax.ShapeDtypeStruct((padded_b, OUT_LANES), jnp.float32),
        in_specs=specs,
        out_specs=pl.BlockSpec((tile_b, OUT_LANES), lambda i: (i, 0)),
        compiler_params=pltpu.CompilerParams(
            # Batch axis is embarrassingly parallel -> shards across the two
            # TensorCores on v7x; harmless elsewhere.
            dimension_semantics=("parallel",),
            # TILE_B <= 256 keeps per-call VMEM well under 1 MiB; 32 MiB fits
            # every chip's scoped budget (incl. v7x's 64 MiB physical VMEM).
            vmem_limit_bytes=32 * 1024 * 1024),
    )(x_categorical, x_numerical, *flat)

    # Lane-dense slab -> logical (B, 1) output.
    return out[:B, :1]


# -----------------------------------------------------------------------------
# Pure-JAX reference (PyTorch-faithful)
# -----------------------------------------------------------------------------
def reference_forward(x_numerical, x_categorical, params, negative_slope=0.01):
    embs = [tbl[x_categorical[:, i]]
            for i, tbl in enumerate(params["embedding_tables"])]
    h = jnp.concatenate(embs, axis=1)
    L = len(params["dnn_w"])
    for i, (w, b) in enumerate(zip(params["dnn_w"], params["dnn_b"])):
        h = h @ w + b
        if i == L - 1 and L > 1:
            h = jnp.tanh(h)
        else:
            h = jnp.where(h > 0, h, negative_slope * h)
    wp = jnp.concatenate([params["wp_deep"], params["wp_num"]], axis=0)
    concat = jnp.concatenate([h, x_numerical], axis=1)
    return jax.nn.sigmoid(concat @ wp + params["bp"])


# -----------------------------------------------------------------------------
# Demo / self-test
# -----------------------------------------------------------------------------
if __name__ == "__main__":
    n_numeric_features = 8
    categorical_features = [10, 20, 30, 40]
    dnn_layer_sizes = [64, 32]
    embedding_dim = 32
    batch = 8

    key = jax.random.PRNGKey(0)
    kp, kn, kc, kn2, kc2 = jax.random.split(key, 5)

    params = init_params(kp, n_numeric_features, categorical_features,
                         dnn_layer_sizes, embedding_dim)
    packed = pack_params(params)

    x_numerical = jax.random.normal(kn, (batch, n_numeric_features),
                                    dtype=jnp.float32)
    cat_keys = jax.random.split(kc, len(categorical_features))
    x_categorical = jnp.stack(
        [jax.random.randint(cat_keys[i], (batch,), 0, n, dtype=jnp.int32)
         for i, n in enumerate(categorical_features)], axis=1)

    ref = reference_forward(x_numerical, x_categorical, params)

    # 1) Exact f32 path.
    out_f32 = wide_and_deep_forward(x_numerical, x_categorical, packed,
                                    compute_dtype=jnp.float32)
    out_f32 = jax.block_until_ready(out_f32)
    assert out_f32.shape == (batch, 1)
    assert jnp.allclose(out_f32, ref, atol=1e-5, rtol=1e-5), (out_f32, ref)

    # 2) bf16-matmul fast path (f32 accumulation + f32 elementwise).
    out_bf16 = wide_and_deep_forward(x_numerical, x_categorical, packed,
                                     compute_dtype=jnp.bfloat16)
    out_bf16 = jax.block_until_ready(out_bf16)
    assert out_bf16.shape == (batch, 1)
    assert jnp.allclose(out_bf16, ref, atol=2e-2), (out_bf16, ref)

    # 3) Larger, non-multiple batch exercising the batch grid + row padding.
    big_b = 200
    x_num_big = jax.random.normal(kn2, (big_b, n_numeric_features),
                                  dtype=jnp.float32)
    cat_keys2 = jax.random.split(kc2, len(categorical_features))
    x_cat_big = jnp.stack(
        [jax.random.randint(cat_keys2[i], (big_b,), 0, n, dtype=jnp.int32)
         for i, n in enumerate(categorical_features)], axis=1)
    out_big = wide_and_deep_forward(x_num_big, x_cat_big, packed,
                                    compute_dtype=jnp.bfloat16, tile_b_max=64)
    out_big = jax.block_until_ready(out_big)
    ref_big = reference_forward(x_num_big, x_cat_big, params)
    assert out_big.shape == (big_b, 1)
    assert jnp.allclose(out_big, ref_big, atol=2e-2), (out_big, ref_big)

    print("KERNEL_OK")
</pallas_src>

<mosaic_0001>
module attributes {stable_mosaic.version = 11 : i64} {
  func.func @kernel(%arg0: i32, %arg1: memref<8x4xi32, #tpu.memory_space<vmem>>, %arg2: memref<8x8xf32, #tpu.memory_space<vmem>>, %arg3: memref<16x32xf32, #tpu.memory_space<vmem>>, %arg4: memref<24x32xf32, #tpu.memory_space<vmem>>, %arg5: memref<32x32xf32, #tpu.memory_space<vmem>>, %arg6: memref<40x32xf32, #tpu.memory_space<vmem>>, %arg7: memref<128x128xf32, #tpu.memory_space<vmem>>, %arg8: memref<1x128xf32, #tpu.memory_space<vmem>>, %arg9: memref<128x128xf32, #tpu.memory_space<vmem>>, %arg10: memref<1x128xf32, #tpu.memory_space<vmem>>, %arg11: memref<1x128xf32, #tpu.memory_space<vmem>>, %arg12: memref<1x8xf32, #tpu.memory_space<vmem>>, %arg13: memref<1x1xf32, #tpu.memory_space<vmem>>, %arg14: memref<8x128xf32, #tpu.memory_space<vmem>>) attributes {dimension_semantics = [#tpu.dimension_semantics<parallel>], iteration_bounds = array<i64: 1>, scalar_prefetch = 0 : i64, scratch_operands = 0 : i64, tpu.core_type = #tpu.core_type<tc>, window_params = [{transform_indices = @transform_0, window_bounds = array<i64: 8, 4>}, {transform_indices = @transform_1, window_bounds = array<i64: 8, 8>}, {pipeline_mode = #tpu.pipeline_mode<synchronous>, transform_indices = @transform_2, window_bounds = array<i64: 16, 32>}, {pipeline_mode = #tpu.pipeline_mode<synchronous>, transform_indices = @transform_3, window_bounds = array<i64: 24, 32>}, {pipeline_mode = #tpu.pipeline_mode<synchronous>, transform_indices = @transform_4, window_bounds = array<i64: 32, 32>}, {pipeline_mode = #tpu.pipeline_mode<synchronous>, transform_indices = @transform_5, window_bounds = array<i64: 40, 32>}, {pipeline_mode = #tpu.pipeline_mode<synchronous>, transform_indices = @transform_6, window_bounds = array<i64: 128, 128>}, {pipeline_mode = #tpu.pipeline_mode<synchronous>, transform_indices = @transform_7, window_bounds = array<i64: 1, 128>}, {pipeline_mode = #tpu.pipeline_mode<synchronous>, transform_indices = @transform_8, window_bounds = array<i64: 128, 128>}, {pipeline_mode = #tpu.pipeline_mode<synchronous>, transform_indices = @transform_9, window_bounds = array<i64: 1, 128>}, {pipeline_mode = #tpu.pipeline_mode<synchronous>, transform_indices = @transform_10, window_bounds = array<i64: 1, 128>}, {pipeline_mode = #tpu.pipeline_mode<synchronous>, transform_indices = @transform_11, window_bounds = array<i64: 1, 8>}, {pipeline_mode = #tpu.pipeline_mode<synchronous>, transform_indices = @transform_12, window_bounds = array<i64: 1, 1>}, {transform_indices = @transform_13, window_bounds = array<i64: 8, 128>}]} {
    %c0 = arith.constant 0 : index
    %c0_0 = arith.constant 0 : index
    %0 = vector.load %arg8[%c0, %c0_0] : memref<1x128xf32, #tpu.memory_space<vmem>>, vector<1x128xf32>
    %cst = arith.constant 0.000000e+00 : f32
    %1 = vector.broadcast %cst : f32 to vector<8x128xf32>
    %c0_1 = arith.constant 0 : index
    %c0_2 = arith.constant 0 : index
    %2 = vector.load %arg1[%c0_1, %c0_2] : memref<8x4xi32, #tpu.memory_space<vmem>>, vector<8x1xi32>
    %3 = tpu.iota {dimensions = array<i32: 1>} : vector<8x16xi32>
    %4 = vector.broadcast %2 : vector<8x1xi32> to vector<8x16xi32>
    %5 = arith.cmpi eq, %4, %3 : vector<8x16xi32>
    %6 = arith.extui %5 : vector<8x16xi1> to vector<8x16xi32>
    %7 = arith.sitofp %6 : vector<8x16xi32> to vector<8x16xf32>
    %c0_3 = arith.constant 0 : index
    %c0_4 = arith.constant 0 : index
    %8 = vector.load %arg3[%c0_3, %c0_4] : memref<16x32xf32, #tpu.memory_space<vmem>>, vector<16x32xf32>
    %cst_5 = arith.constant dense<0.000000e+00> : vector<8x32xf32>
    %9 = tpu.matmul %7, %8, %cst_5 {dimension_numbers = #tpu.dot_dimension_numbers<[1], [0], [0], [1], [0, 0, 1, 1], [], []>} : vector<8x16xf32>, vector<16x32xf32>, vector<8x32xf32> -> vector<8x32xf32>
    %c0_6 = arith.constant 0 : index
    %c0_7 = arith.constant 0 : index
    %10 = vector.load %arg7[%c0_6, %c0_7] : memref<128x128xf32, #tpu.memory_space<vmem>>, vector<32x128xf32>
    %cst_8 = arith.constant dense<0.000000e+00> : vector<8x128xf32>
    %11 = tpu.matmul %9, %10, %cst_8 {dimension_numbers = #tpu.dot_dimension_numbers<[1], [0], [0], [1], [0, 0, 1, 1], [], []>} : vector<8x32xf32>, vector<32x128xf32>, vector<8x128xf32> -> vector<8x128xf32>
    %12 = arith.addf %1, %11 : vector<8x128xf32>
    %c0_9 = arith.constant 0 : index
    %c1 = arith.constant 1 : index
    %13 = vector.load %arg1[%c0_9, %c1] : memref<8x4xi32, #tpu.memory_space<vmem>>, vector<8x1xi32>
    %14 = tpu.iota {dimensions = array<i32: 1>} : vector<8x24xi32>
    %15 = vector.broadcast %13 : vector<8x1xi32> to vector<8x24xi32>
    %16 = arith.cmpi eq, %15, %14 : vector<8x24xi32>
    %17 = arith.extui %16 : vector<8x24xi1> to vector<8x24xi32>
    %18 = arith.sitofp %17 : vector<8x24xi32> to vector<8x24xf32>
    %c0_10 = arith.constant 0 : index
    %c0_11 = arith.constant 0 : index
    %19 = vector.load %arg4[%c0_10, %c0_11] : memref<24x32xf32, #tpu.memory_space<vmem>>, vector<24x32xf32>
    %cst_12 = arith.constant dense<0.000000e+00> : vector<8x32xf32>
    %20 = tpu.matmul %18, %19, %cst_12 {dimension_numbers = #tpu.dot_dimension_numbers<[1], [0], [0], [1], [0, 0, 1, 1], [], []>} : vector<8x24xf32>, vector<24x32xf32>, vector<8x32xf32> -> vector<8x32xf32>
    %c32 = arith.constant 32 : index
    %c0_13 = arith.constant 0 : index
    %21 = vector.load %arg7[%c32, %c0_13] : memref<128x128xf32, #tpu.memory_space<vmem>>, vector<32x128xf32>
    %cst_14 = arith.constant dense<0.000000e+00> : vector<8x128xf32>
    %22 = tpu.matmul %20, %21, %cst_14 {dimension_numbers = #tpu.dot_dimension_numbers<[1], [0], [0], [1], [0, 0, 1, 1], [], []>} : vector<8x32xf32>, vector<32x128xf32>, vector<8x128xf32> -> vector<8x128xf32>
    %23 = arith.addf %12, %22 : vector<8x128xf32>
    %c0_15 = arith.constant 0 : index
    %c2 = arith.constant 2 : index
    %24 = vector.load %arg1[%c0_15, %c2] : memref<8x4xi32, #tpu.memory_space<vmem>>, vector<8x1xi32>
    %25 = tpu.iota {dimensions = array<i32: 1>} : vector<8x32xi32>
    %26 = vector.broadcast %24 : vector<8x1xi32> to vector<8x32xi32>
    %27 = arith.cmpi eq, %26, %25 : vector<8x32xi32>
    %28 = arith.extui %27 : vector<8x32xi1> to vector<8x32xi32>
    %29 = arith.sitofp %28 : vector<8x32xi32> to vector<8x32xf32>
    %c0_16 = arith.constant 0 : index
    %c0_17 = arith.constant 0 : index
    %30 = vector.load %arg5[%c0_16, %c0_17] : memref<32x32xf32, #tpu.memory_space<vmem>>, vector<32x32xf32>
    %cst_18 = arith.constant dense<0.000000e+00> : vector<8x32xf32>
    %31 = tpu.matmul %29, %30, %cst_18 {dimension_numbers = #tpu.dot_dimension_numbers<[1], [0], [0], [1], [0, 0, 1, 1], [], []>} : vector<8x32xf32>, vector<32x32xf32>, vector<8x32xf32> -> vector<8x32xf32>
    %c64 = arith.constant 64 : index
    %c0_19 = arith.constant 0 : index
    %32 = vector.load %arg7[%c64, %c0_19] : memref<128x128xf32, #tpu.memory_space<vmem>>, vector<32x128xf32>
    %cst_20 = arith.constant dense<0.000000e+00> : vector<8x128xf32>
    %33 = tpu.matmul %31, %32, %cst_20 {dimension_numbers = #tpu.dot_dimension_numbers<[1], [0], [0], [1], [0, 0, 1, 1], [], []>} : vector<8x32xf32>, vector<32x128xf32>, vector<8x128xf32> -> vector<8x128xf32>
    %34 = arith.addf %23, %33 : vector<8x128xf32>
    %c0_21 = arith.constant 0 : index
    %c3 = arith.constant 3 : index
    %35 = vector.load %arg1[%c0_21, %c3] : memref<8x4xi32, #tpu.memory_space<vmem>>, vector<8x1xi32>
    %36 = tpu.iota {dimensions = array<i32: 1>} : vector<8x40xi32>
    %37 = vector.broadcast %35 : vector<8x1xi32> to vector<8x40xi32>
    %38 = arith.cmpi eq, %37, %36 : vector<8x40xi32>
    %39 = arith.extui %38 : vector<8x40xi1> to vector<8x40xi32>
    %40 = arith.sitofp %39 : vector<8x40xi32> to vector<8x40xf32>
    %c0_22 = arith.constant 0 : index
    %c0_23 = arith.constant 0 : index
    %41 = vector.load %arg6[%c0_22, %c0_23] : memref<40x32xf32, #tpu.memory_space<vmem>>, vector<40x32xf32>
    %cst_24 = arith.constant dense<0.000000e+00> : vector<8x32xf32>
    %42 = tpu.matmul %40, %41, %cst_24 {dimension_numbers = #tpu.dot_dimension_numbers<[1], [0], [0], [1], [0, 0, 1, 1], [], []>} : vector<8x40xf32>, vector<40x32xf32>, vector<8x32xf32> -> vector<8x32xf32>
    %c96 = arith.constant 96 : index
    %c0_25 = arith.constant 0 : index
    %43 = vector.load %arg7[%c96, %c0_25] : memref<128x128xf32, #tpu.memory_space<vmem>>, vector<32x128xf32>
    %cst_26 = arith.constant dense<0.000000e+00> : vector<8x128xf32>
    %44 = tpu.matmul %42, %43, %cst_26 {dimension_numbers = #tpu.dot_dimension_numbers<[1], [0], [0], [1], [0, 0, 1, 1], [], []>} : vector<8x32xf32>, vector<32x128xf32>, vector<8x128xf32> -> vector<8x128xf32>
    %45 = arith.addf %34, %44 : vector<8x128xf32>
    %46 = vector.broadcast %0 : vector<1x128xf32> to vector<8x128xf32>
    %47 = arith.addf %45, %46 : vector<8x128xf32>
    %cst_27 = arith.constant 0.000000e+00 : f32
    %48 = vector.broadcast %cst_27 : f32 to vector<8x128xf32>
    %49 = arith.cmpf ogt, %47, %48 : vector<8x128xf32>
    %cst_28 = arith.constant 0.00999999977 : f32
    %50 = vector.broadcast %cst_28 : f32 to vector<8x128xf32>
    %51 = arith.mulf %50, %47 : vector<8x128xf32>
    %52 = arith.select %49, %47, %51 : vector<8x128xi1>, vector<8x128xf32>
    %c0_29 = arith.constant 0 : index
    %c0_30 = arith.constant 0 : index
    %53 = vector.load %arg9[%c0_29, %c0_30] : memref<128x128xf32, #tpu.memory_space<vmem>>, vector<128x128xf32>
    %c0_31 = arith.constant 0 : index
    %c0_32 = arith.constant 0 : index
    %54 = vector.load %arg10[%c0_31, %c0_32] : memref<1x128xf32, #tpu.memory_space<vmem>>, vector<1x128xf32>
    %cst_33 = arith.constant dense<0.000000e+00> : vector<8x128xf32>
    %55 = tpu.matmul %52, %53, %cst_33 {dimension_numbers = #tpu.dot_dimension_numbers<[1], [0], [0], [1], [0, 0, 1, 1], [], []>} : vector<8x128xf32>, vector<128x128xf32>, vector<8x128xf32> -> vector<8x128xf32>
    %56 = vector.broadcast %54 : vector<1x128xf32> to vector<8x128xf32>
    %57 = arith.addf %55, %56 : vector<8x128xf32>
    %58 = math.tanh %57 : vector<8x128xf32>
    %c0_34 = arith.constant 0 : index
    %c0_35 = arith.constant 0 : index
    %59 = vector.load %arg11[%c0_34, %c0_35] : memref<1x128xf32, #tpu.memory_space<vmem>>, vector<1x128xf32>
    %60 = vector.broadcast %59 : vector<1x128xf32> to vector<8x128xf32>
    %61 = arith.mulf %58, %60 : vector<8x128xf32>
    %cst_36 = arith.constant dense<0.000000e+00> : vector<8xf32>
    %62 = vector.multi_reduction <add>, %61, %cst_36 [1] : vector<8x128xf32> to vector<8xf32>
    %63 = vector.shape_cast %62 : vector<8xf32> to vector<8x1xf32>
    %c0_37 = arith.constant 0 : index
    %c0_38 = arith.constant 0 : index
    %64 = vector.load %arg2[%c0_37, %c0_38] : memref<8x8xf32, #tpu.memory_space<vmem>>, vector<8x8xf32>
    %c0_39 = arith.constant 0 : index
    %c0_40 = arith.constant 0 : index
    %65 = vector.load %arg12[%c0_39, %c0_40] : memref<1x8xf32, #tpu.memory_space<vmem>>, vector<1x8xf32>
    %66 = vector.broadcast %65 : vector<1x8xf32> to vector<8x8xf32>
    %67 = arith.mulf %64, %66 : vector<8x8xf32>
    %cst_41 = arith.constant dense<0.000000e+00> : vector<8xf32>
    %68 = vector.multi_reduction <add>, %67, %cst_41 [1] : vector<8x8xf32> to vector<8xf32>
    %69 = vector.shape_cast %68 : vector<8xf32> to vector<8x1xf32>
    %70 = arith.addf %63, %69 : vector<8x1xf32>
    %c0_42 = arith.constant 0 : index
    %c0_43 = arith.constant 0 : index
    %71 = vector.load %arg13[%c0_42, %c0_43] : memref<1x1xf32, #tpu.memory_space<vmem>>, vector<1x1xf32>
    %72 = vector.broadcast %71 : vector<1x1xf32> to vector<8x1xf32>
    %73 = arith.addf %70, %72 : vector<8x1xf32>
    %74 = arith.negf %73 : vector<8x1xf32>
    %75 = math.exp %74 : vector<8x1xf32>
    %cst_44 = arith.constant 1.000000e+00 : f32
    %76 = vector.broadcast %cst_44 : f32 to vector<8x1xf32>
    %77 = arith.addf %76, %75 : vector<8x1xf32>
    %78 = arith.divf %76, %77 : vector<8x1xf32>
    %79 = vector.shape_cast %78 : vector<8x1xf32> to vector<8x1xf32>
    %80 = vector.broadcast %79 : vector<8x1xf32> to vector<8x128xf32>
    %c0_45 = arith.constant 0 : index
    %c0_46 = arith.constant 0 : index
    %81 = vector.load %arg14[%c0_45, %c0_46] : memref<8x128xf32, #tpu.memory_space<vmem>>, vector<8x128xf32>
    tpu.vector_store %arg14[%c0_45, %c0_46], %80 {strides = array<i32>} : memref<8x128xf32, #tpu.memory_space<vmem>>, vector<8x128xf32>,
    return
  }
  func.func @transform_0(%arg0: i32) -> (i32, i32) {
    %c0_i32 = arith.constant 0 : i32
    %c0_i32_0 = arith.constant 0 : i32
    return %arg0, %c0_i32 : i32, i32
  }
  func.func @transform_1(%arg0: i32) -> (i32, i32) {
    %c0_i32 = arith.constant 0 : i32
    %c0_i32_0 = arith.constant 0 : i32
    return %arg0, %c0_i32 : i32, i32
  }
  func.func @transform_2(%arg0: i32) -> (i32, i32) {
    %c0_i32 = arith.constant 0 : i32
    %c0_i32_0 = arith.constant 0 : i32
    %c0_i32_1 = arith.constant 0 : i32
    return %c0_i32, %c0_i32_0 : i32, i32
  }
  func.func @transform_3(%arg0: i32) -> (i32, i32) {
    %c0_i32 = arith.constant 0 : i32
    %c0_i32_0 = arith.constant 0 : i32
    %c0_i32_1 = arith.constant 0 : i32
    return %c0_i32, %c0_i32_0 : i32, i32
  }
  func.func @transform_4(%arg0: i32) -> (i32, i32) {
    %c0_i32 = arith.constant 0 : i32
    %c0_i32_0 = arith.constant 0 : i32
    %c0_i32_1 = arith.constant 0 : i32
    return %c0_i32, %c0_i32_0 : i32, i32
  }
  func.func @transform_5(%arg0: i32) -> (i32, i32) {
    %c0_i32 = arith.constant 0 : i32
    %c0_i32_0 = arith.constant 0 : i32
    %c0_i32_1 = arith.constant 0 : i32
    return %c0_i32, %c0_i32_0 : i32, i32
  }
  func.func @transform_6(%arg0: i32) -> (i32, i32) {
    %c0_i32 = arith.constant 0 : i32
    %c0_i32_0 = arith.constant 0 : i32
    %c0_i32_1 = arith.constant 0 : i32
    return %c0_i32, %c0_i32_0 : i32, i32
  }
  func.func @transform_7(%arg0: i32) -> (i32, i32) {
    %c0_i32 = arith.constant 0 : i32
    %c0_i32_0 = arith.constant 0 : i32
    %c0_i32_1 = arith.constant 0 : i32
    return %c0_i32, %c0_i32_0 : i32, i32
  }
  func.func @transform_8(%arg0: i32) -> (i32, i32) {
    %c0_i32 = arith.constant 0 : i32
    %c0_i32_0 = arith.constant 0 : i32
    %c0_i32_1 = arith.constant 0 : i32
    return %c0_i32, %c0_i32_0 : i32, i32
  }
  func.func @transform_9(%arg0: i32) -> (i32, i32) {
    %c0_i32 = arith.constant 0 : i32
    %c0_i32_0 = arith.constant 0 : i32
    %c0_i32_1 = arith.constant 0 : i32
    return %c0_i32, %c0_i32_0 : i32, i32
  }
  func.func @transform_10(%arg0: i32) -> (i32, i32) {
    %c0_i32 = arith.constant 0 : i32
    %c0_i32_0 = arith.constant 0 : i32
    %c0_i32_1 = arith.constant 0 : i32
    return %c0_i32, %c0_i32_0 : i32, i32
  }
  func.func @transform_11(%arg0: i32) -> (i32, i32) {
    %c0_i32 = arith.constant 0 : i32
    %c0_i32_0 = arith.constant 0 : i32
    %c0_i32_1 = arith.constant 0 : i32
    return %c0_i32, %c0_i32_0 : i32, i32
  }
  func.func @transform_12(%arg0: i32) -> (i32, i32) {
    %c0_i32 = arith.constant 0 : i32
    %c0_i32_0 = arith.constant 0 : i32
    %c0_i32_1 = arith.constant 0 : i32
    return %c0_i32, %c0_i32_0 : i32, i32
  }
  func.func @transform_13(%arg0: i32) -> (i32, i32) {
    %c0_i32 = arith.constant 0 : i32
    %c0_i32_0 = arith.constant 0 : i32
    return %arg0, %c0_i32 : i32, i32
  }
}

</mosaic_0001>

<bundles_post_ra>
// kernel: wide_and_deep_forward.1
= control target key start
LH: loop header
LB: loop body
LE: loop exit
PB: predicated region body
PF: predicated region fallthrough
CT: control target
= control target key end

     0   :  { %s1435_s0 = inlined_call_operand.vmem [shape: s32[8,4], index: 0, kind: input, shape index: {}]   ;;  %s1436_s1 = inlined_call_operand.vmem [shape: f32[8,8], index: 1, kind: input, shape index: {}]   ;;  %s1437_s2 = inlined_call_operand.vmem [shape: f32[16,32], index: 2, kind: input, shape index: {}]   ;;  %s1438_s3 = inlined_call_operand.vmem [shape: f32[24,32], index: 3, kind: input, shape index: {}]   ;;  %s1439_s4 = inlined_call_operand.vmem [shape: f32[32,32], index: 4, kind: input, shape index: {}]   ;;  %s1440_s5 = inlined_call_operand.vmem [shape: f32[40,32], index: 5, kind: input, shape index: {}]   ;;  %s1441_s6 = inlined_call_operand.hbm [shape: f32[128,128], index: 6, kind: input, shape index: {}]   ;;  %s1442_s7 = inlined_call_operand.vmem [shape: f32[1,128], index: 7, kind: input, shape index: {}]   ;;  %s1443_s8 = inlined_call_operand.hbm [shape: f32[128,128], index: 8, kind: input, shape index: {}]   ;;  %s1444_s9 = inlined_call_operand.vmem [shape: f32[1,128], index: 9, kind: input, shape index: {}]   ;;  %s1445_s10 = inlined_call_operand.vmem [shape: f32[1,128], index: 10, kind: input, shape index: {}]   ;;  %s1446_s11 = inlined_call_operand.vmem [shape: f32[1,8], index: 11, kind: input, shape index: {}]   ;;  %s1447_s12 = inlined_call_operand.<no memory space> [shape: f32[1,1], index: 12, kind: input, shape index: {}]   ;;  %s1448_s13 = inlined_call_operand.vmem [shape: f32[8,128], index: 13, kind: output, shape index: {}]  }
   0x1   :  { %v18_v0 = vstv %s1447_s12 }
   0x2   :  { %19 = vst [vmem:[#allocation2] sm:$0x1] %v18_v0 }
   0x3   :  { %20 = vsyncpa [#allocation4], 0 }
   0x4   :  { %21 = vsyncpa [#allocation6], 0  ;;  %s1204_s27 = smov [#allocation3]   ;;  %s1156_s14 = scalar_lea.hbm %s1441_s6, 2048 }
   0x5   :  { %s39_s28 = sshll.u32 %s1204_s27, 4  ;;  %p1157_p0 = scmp.ne.s32.totalorder %s1441_s6, %s1156_s14  ;;  %s40_s28 = int_to_ptr.vmem [resolvable:$true] %s39_s28 }
   0x6   :  { %p1160_p1 = scmp.lt.u32.totalorder %s1156_s14, %s1441_s6 }
   0x8   :  { %p1162_p2 = pnand %p1160_p1, %p1157_p0 }
   0xa   :  { %1165 = shalt.err (!%p1162_p2)
}
   0xb   :  { %s1166_s12 = scalar_lea.vmem %s40_s28, 2048  ;;  %p1171_p4 = scmp.lt.s32.totalorder %s40_s28, %s40_s28 }
   0xc   :  { %p1167_p3 = scmp.ne.s32.totalorder %s40_s28, %s1166_s12  ;;  %p1172_p5 = scmp.lt.s32.totalorder %s1166_s12, %s1166_s12 }
   0xe   :  { %p1173_p6 = por %p1172_p5, %p1171_p4 }
  0x10   :  { %p1174_p7 = pnand %p1173_p6, %p1167_p3 }
  0x12   :  { %1177 = shalt.err (!%p1174_p7)
}
  0x13   :  { %s1205_s19 = smov 128   ;;  %s1206_s20 = smov 8  }
  0x14   :  { %45 = dma.hbm_to_vmem [thread:$0]  %s1441_s6, 2048, %s40_s28, [#allocation4], %s1205_s19, %s1205_s19, %s1206_s20  }
  0x15   :  { %s1207_s23 = smov [#allocation5]   ;;  %s1178_s27 = scalar_lea.hbm %s1443_s8, 2048 }
  0x16   :  { %s53_s24 = sshll.u32 %s1207_s23, 4  ;;  %p1179_p8 = scmp.ne.s32.totalorder %s1443_s8, %s1178_s27  ;;  %s54_s24 = int_to_ptr.vmem [resolvable:$true] %s53_s24 }
  0x17   :  { %p1182_p9 = scmp.lt.u32.totalorder %s1178_s27, %s1443_s8 }
  0x19   :  { %p1184_p10 = pnand %p1182_p9, %p1179_p8 }
  0x1b   :  { %1187 = shalt.err (!%p1184_p10)
}
  0x1c   :  { %s1188_s16 = scalar_lea.vmem %s54_s24, 2048  ;;  %p1193_p12 = scmp.lt.s32.totalorder %s54_s24, %s54_s24 }
  0x1d   :  { %p1189_p11 = scmp.ne.s32.totalorder %s54_s24, %s1188_s16  ;;  %p1194_p13 = scmp.lt.s32.totalorder %s1188_s16, %s1188_s16 }
  0x1f   :  { %p1195_p0 = por %p1194_p13, %p1193_p12 }
  0x21   :  { %p1196_p1 = pnand %p1195_p0, %p1189_p11 }
  0x23   :  { %1199 = shalt.err (!%p1196_p1)
}
  0x24   :  { %59 = dma.hbm_to_vmem [thread:$0]  %s1443_s8, 2048, %s54_s24, [#allocation6], %s1205_s19, %s1205_s19, %s1206_s20  }
  0x25   :  { %1200 = dma.done.wait [#allocation4], 2048  }
  0x26   :  { %1201 = vsyncadd [#allocation4], 4294965248 }
  0x27   :  { %1202 = dma.done.wait [#allocation6], 2048  }
  0x28   :  { %1203 = vsyncadd [#allocation6], 4294965248  ;;  %v1208_v1 = vmov 0   ;;  %v1209_v2 = vmov 0.0|0.0   ;;  %v75_v3 = vld [vmem:[%s1435_s0] sm:$0xff]  ;;  %v85_v5 = vld [vmem:[%s1437_s2 + $0x8] sm:$0xff]  ;;  %v76_v13 = vlaneseq }
  0x29   :  { %1145 = vset.pattern.permute.xlu0 %v1208_v1  ;;  %1068 = vmatprep.subr.bf16.mxu1 %v1209_v2  ;;  %v84_v4 = vld [vmem:[%s1437_s2] sm:$0xff]  ;;  %vm1210_vm0 = vmmov 0   ;;  %v1211_v7 = vmov 0.0   ;;  %v1212_v8 = vmov 1   ;;  %v1213_v9 = vmov 2   ;;  %v248_v11 = vld [vmem:[#allocation3 + $0x28] sm:$0xff] }
  0x2a   :  { %1074 = vmatprep.subr.bf16.mxu0 %v1209_v2  ;;  %79 = vperm.xlu0 %1145, %v75_v3   ;;  %v1069_v6 = vpack.c.bf16 %v85_v5, %v84_v4  ;;  %v247_v10 = vld [vmem:[#allocation3 + $0x20] sm:$0xff]  ;;  %v1329_v14 = vand.u32 127, %v76_v13  ;;  %vm86_vm1 = vcmask 130048   ;;  %v161_v21 = vld [vmem:[#allocation3 + $0x8] sm:$0xff]  ;;  %vm173_vm4 = vcmask 195584   ;;  %v162_v26 = vld [vmem:[#allocation3 + $0x10] sm:$0xff] }
  0x2b   :  { %953 = vmatprep.mubr.msk.f32.mxu1 %vm1210_vm0, %v1211_v7  ;;  %973 = vmatprep.mubr.msk.f32.mxu0 %vm1210_vm0, %v1211_v7  ;;  %v1075_v12 = vpack.c.bf16 %v248_v11, %v247_v10  ;;  %v170_v15 = vld [vmem:[%s1438_s3] sm:$0xff]  ;;  %v171_v16 = vld [vmem:[%s1438_s3 + $0x8] sm:$0xff]  ;;  %v172_v23 = vld [vmem:[%s1438_s3 + $0x10] sm:$0xff]  ;;  %v1214_v32 = vmov 3   ;;  %vm251_vm5 = vcmask 261120   ;;  %vm570_vm8 = vcmask 326656  }
  0x2c   :  { %1070 = vmatpush3.bf16.msra.mxu1 %v1069_v6  ;;  %1147 = vset.pattern.permute.xlu1 %v1213_v9  ;;  %v1072_v18 = vpack.c.bf16 %v171_v16, %v170_v15  ;;  %v160_v20 = vld [vmem:[#allocation3] sm:$0xff]  ;;  %v163_v27 = vld [vmem:[#allocation3 + $0x18] sm:$0xff]  ;;  %v249_v29 = vld [vmem:[#allocation3 + $0x30] sm:$0xff]  ;;  %vm845_vm10 = vcmask 64512  }
  0x2d   :  { %1071 = vmatprep.subr.bf16.mxu1 %v1209_v2  ;;  %399 = vperm.xlu1 %1147, %v75_v3   ;;  %v1081_v24 = vpack.c.bf16 %v161_v21, %v160_v20  ;;  %v1084_v28 = vpack.c.bf16 %v163_v27, %v162_v26  ;;  %v250_v30 = vld [vmem:[#allocation3 + $0x38] sm:$0xff]  ;;  %v405_v36 = vld [vmem:[%s1439_s4 + $0x8] sm:$0xff]  ;;  %v406_v38 = vld [vmem:[%s1439_s4 + $0x10] sm:$0xff] }
  0x2e   :  { %1146 = vset.pattern.permute.xlu0 %v1212_v8  ;;  %1076 = vmatpush3.bf16.msra.mxu0 %v1075_v12  ;;  %v1078_v31 = vpack.c.bf16 %v250_v30, %v249_v29  ;;  %v404_v35 = vld [vmem:[%s1439_s4] sm:$0xff]  ;;  %v407_v39 = vld [vmem:[%s1439_s4 + $0x18] sm:$0xff]  ;;  %v482_v46 = vld [vmem:[#allocation3 + $0x48] sm:$0xff] }
  0x2f   :  { %165 = vperm.xlu0 %1146, %v75_v3   ;;  %1077 = vmatprep.subr.bf16.mxu0 %v1209_v2  ;;  %v1087_v37 = vpack.c.bf16 %v405_v36, %v404_v35  ;;  %v1090_v43 = vpack.c.bf16 %v407_v39, %v406_v38  ;;  %v481_v45 = vld [vmem:[#allocation3 + $0x40] sm:$0xff]  ;;  %v483_v48 = vld [vmem:[#allocation3 + $0x50] sm:$0xff]  ;;  %v484_v49 = vld [vmem:[#allocation3 + $0x58] sm:$0xff] }
  0x30   :  { %v1093_v47 = vpack.c.bf16 %v482_v46, %v481_v45  ;;  %v1096_v50 = vpack.c.bf16 %v484_v49, %v483_v48  ;;  %v565_v56 = vld [vmem:[%s1440_s5] sm:$0xff]  ;;  %v566_v57 = vld [vmem:[%s1440_s5 + $0x8] sm:$0xff]  ;;  %v567_v59 = vld [vmem:[%s1440_s5 + $0x10] sm:$0xff] }
  0x31   :  { %1148 = vset.pattern.permute.xlu1 %v1214_v32  ;;  %v1099_v58 = vpack.c.bf16 %v566_v57, %v565_v56  ;;  %v568_v60 = vld [vmem:[%s1440_s5 + $0x18] sm:$0xff]  ;;  %v644_v4 = vld [vmem:[#allocation3 + $0x60] sm:$0xff]  ;;  %v645_v5 = vld [vmem:[#allocation3 + $0x68] sm:$0xff] }
  0x32   :  { %1079 = vmatpush3.bf16.msra.mxu0 %v1078_v31  ;;  %560 = vperm.xlu1 %1148, %v75_v3   ;;  %v1102_v63 = vpack.c.bf16 %v568_v60, %v567_v59  ;;  %v646_v6 = vld [vmem:[#allocation3 + $0x70] sm:$0xff]  ;;  %v1105_v8 = vpack.c.bf16 %v645_v5, %v644_v4  ;;  %v647_v9 = vld [vmem:[#allocation3 + $0x78] sm:$0xff]  ;;  %v732_v11 = vld [vmem:[#allocation5] sm:$0xff] }
  0x33   :  { %1149 = vset.pattern.permute.xlu0 %v1208_v1  ;;  %1086 = vmatprep.subr.bf16.mxu0 %v1209_v2  ;;  %v569_v1 = vld [vmem:[%s1440_s5 + $0x20] sm:$0xff]  ;;  %v1108_v10 = vpack.c.bf16 %v647_v9, %v646_v6  ;;  %v733_v12 = vld [vmem:[#allocation5 + $0x8] sm:$0xff]  ;;  %v734_v13 = vld [vmem:[#allocation5 + $0x10] sm:$0xff] }
  0x34   :  { %v735_v15 = vld [vmem:[#allocation5 + $0x18] sm:$0xff]  ;;  %v746_v36 = vld [vmem:[#allocation5 + $0x70] sm:$0xff] }
  0x35   :  { %v1114_v16 = vpack.c.bf16 %v735_v15, %v734_v13  ;;  %v739_v20 = vld [vmem:[#allocation5 + $0x38] sm:$0xff] }
  0x36   :  { %v743_v26 = vld [vmem:[#allocation5 + $0x58] sm:$0xff] }
  0x37   :  { %v888_v39 = vld [vmem:[%s1442_s7] ss:$0 sm:$0xff] }
  0x38   :  { %v891_v46 = vld [vmem:[%s1446_s11] ss:$0 sm:$0xff] }
  0x39   :  { %v889_v49 = vld [vmem:[%s1444_s9] ss:$0 sm:$0xff] }
  0x3a   :  { %v892_v57 = vld [vmem:[#allocation2] ss:$0 sm:$0xff] }
  0xa9   :  { %v80_v17 = vpop.permute.xlu0 %79 }
  0xaa   :  { %vm81_vm2 = vcmp.eq.s32.totalorder %v80_v17, %v1329_v14  ;;  %v737_v17 = vld [vmem:[#allocation5 + $0x28] sm:$0xff] }
  0xab   :  { %v876_v19 = vsel %vm81_vm2, 1.0, %v1211_v7 }
  0xac   :  { %954 = vmatmul.mubr.msk.f32.vlgmr.msra.gmra.mrb[0].mxu1 %vm86_vm1, %v876_v19  ;;  %v400_v41 = vpop.permute.xlu1 %399  ;;  %v738_v19 = vld [vmem:[#allocation5 + $0x30] sm:$0xff] }
  0xad   :  { %1073 = vmatpush3.bf16.msra.mxu1 %v1072_v18  ;;  %962 = vmatprep.mubr.msk.f32.mxu1 %vm1210_vm0, %v1211_v7  ;;  %vm401_vm6 = vcmp.eq.s32.totalorder %v400_v41, %v1329_v14  ;;  %v1120_v21 = vpack.c.bf16 %v739_v20, %v738_v19 }
  0xae   :  { %v166_v22 = vpop.permute.xlu0 %165  ;;  %960 = vmatprep.subr.mxu1 %v1211_v7  ;;  %v882_v44 = vsel %vm401_vm6, 1.0, %v1211_v7 }
  0xaf   :  { %vm167_vm3 = vcmp.eq.s32.totalorder %v166_v22, %v1329_v14  ;;  %v740_v22 = vld [vmem:[#allocation5 + $0x40] sm:$0xff] }
  0xb0   :  { %v878_v25 = vsel %vm167_vm3, 1.0, %v1211_v7 }
  0xb1   :  { %961 = vmatpush3.msra.mxu1 %v172_v23  ;;  %v561_v0 = vpop.permute.xlu1 %560  ;;  %v741_v23 = vld [vmem:[#allocation5 + $0x48] sm:$0xff] }
  0xb2   :  { %963 = vmatmul.mubr.msk.f32.vlgmr.msra.gmra.mrb[2].mxu1 %vm173_vm4, %v878_v25  ;;  %1080 = vmatprep.subr.bf16.mxu1 %v1209_v2  ;;  %vm562_vm7 = vcmp.eq.s32.totalorder %v561_v0, %v1329_v14  ;;  %v1111_v14 = vpack.c.bf16 %v733_v12, %v732_v11  ;;  %v742_v25 = vld [vmem:[#allocation5 + $0x50] sm:$0xff] }
  0xb3   :  { %1082 = vmatpush3.bf16.msra.mxu1 %v1081_v24  ;;  %984 = vmatprep.mubr.msk.f32.mxu1 %vm1210_vm0, %v1211_v7  ;;  %v885_v3 = vsel %vm562_vm7, 1.0, %v1211_v7  ;;  %v1123_v24 = vpack.c.bf16 %v741_v23, %v740_v22  ;;  %v1126_v27 = vpack.c.bf16 %v743_v26, %v742_v25 }
  0xb4   :  { %1083 = vmatprep.subr.bf16.mxu1 %v1209_v2 }
  0xb7   :  { %1085 = vmatpush3.bf16.msra.mxu1 %v1084_v28 }
  0xb8   :  { %1092 = vmatprep.subr.bf16.mxu1 %v1209_v2 }
 0x17f   :  { %v156_v33 = vpop.f32.mrb[0].mxu1 }
 0x180   :  { %v955_v34 = vpop.f32.mrb[1].mxu1  ;;  %985 = vmatmul.mubr.msk.f32.vlgmr.msra.gmra.mrb[4].mxu1 %vm251_vm5, %v156_v33  ;;  %v744_v33 = vld [vmem:[#allocation5 + $0x60] sm:$0xff] }
 0x181   :  { %1006 = vmatprep.mubr.msk.f32.mxu1 %vm1210_vm0, %v1211_v7  ;;  %1094 = vmatpush3.bf16.msra.mxu1 %v1093_v47  ;;  %v745_v34 = vld [vmem:[#allocation5 + $0x68] sm:$0xff] }
 0x182   :  { %1095 = vmatprep.subr.bf16.mxu1 %v1209_v2  ;;  %v1129_v35 = vpack.c.bf16 %v745_v34, %v744_v33 }
 0x185   :  { %v243_v40 = vpop.f32.mrb[2].mxu1  ;;  %1097 = vmatpush3.bf16.msra.mxu1 %v1096_v50 }
 0x186   :  { %v964_v42 = vpop.f32.mrb[3].mxu1  ;;  %974 = vmatmul.mubr.msk.f32.vlgmr.msra.gmra.mrb[0].mxu0 %vm251_vm5, %v243_v40  ;;  %1098 = vmatprep.subr.bf16.mxu1 %v1209_v2 }
 0x187   :  { %1088 = vmatpush3.bf16.msra.mxu0 %v1087_v37  ;;  %995 = vmatprep.mubr.msk.f32.mxu0 %vm1210_vm0, %v1211_v7  ;;  %v747_v37 = vld [vmem:[#allocation5 + $0x78] sm:$0xff] }
 0x188   :  { %1089 = vmatprep.subr.bf16.mxu0 %v1209_v2  ;;  %v1132_v38 = vpack.c.bf16 %v747_v37, %v746_v36 }
 0x18b   :  { %1091 = vmatpush3.bf16.msra.mxu0 %v1090_v43 }
 0x18c   :  { %1110 = vmatprep.subr.bf16.mxu0 %v1209_v2 }
 0x18e   :  { %996 = vmatmul.mubr.msk.f32.vlgmr.msra.gmra.mrb[2].mxu0 %vm251_vm5, %v882_v44 }
 0x18f   :  { %1065 = vmatprep.mubr.msk.f32.mxu0 %vm1210_vm0, %v1211_v7  ;;  %1112 = vmatpush3.bf16.msra.mxu0 %v1111_v14 }
 0x190   :  { %1113 = vmatprep.subr.bf16.mxu0 %v1209_v2 }
 0x193   :  { %1115 = vmatpush3.bf16.msra.mxu0 %v1114_v16 }
 0x194   :  { %1116 = vmatprep.subr.bf16.mxu0 %v1209_v2 }
 0x253   :  { %v394_v51 = vpop.f32.mrb[4].mxu1 }
 0x254   :  { %v986_v52 = vpop.f32.mrb[5].mxu1 }
 0x259   :  { %v321_v53 = vpop.f32.mrb[0].mxu0 }
 0x25a   :  { %v1380_v54 = vadd.f32 %v394_v51, %v321_v53  ;;  %v975_v55 = vpop.f32.mrb[1].mxu0  ;;  %v890_v53 = vld [vmem:[%s1445_s10] ss:$0 sm:$0xff] }
 0x261   :  { %v477_v61 = vpop.f32.mrb[2].mxu0 }
 0x262   :  { %v997_v62 = vpop.f32.mrb[3].mxu0  ;;  %1007 = vmatmul.mubr.msk.f32.vlgmr.msra.gmra.mrb[6].mxu1 %vm251_vm5, %v477_v61 }
 0x263   :  { %1100 = vmatpush3.bf16.msra.mxu1 %v1099_v58  ;;  %1019 = vmatprep.mubr.msk.f32.mxu1 %vm1210_vm0, %v1211_v7 }
 0x264   :  { %1101 = vmatprep.subr.bf16.mxu1 %v1209_v2 }
 0x267   :  { %1103 = vmatpush3.bf16.msra.mxu1 %v1102_v63 }
 0x268   :  { %1017 = vmatprep.subr.mxu1 %v1211_v7 }
 0x26b   :  { %1018 = vmatpush3.msra.mxu1 %v569_v1 }
 0x26c   :  { %1020 = vmatmul.mubr.msk.f32.vlgmr.msra.gmra.mrb[8].mxu1 %vm570_vm8, %v885_v3  ;;  %1104 = vmatprep.subr.bf16.mxu1 %v1209_v2 }
 0x26d   :  { %1030 = vmatprep.mubr.msk.f32.mxu1 %vm1210_vm0, %v1211_v7  ;;  %1106 = vmatpush3.bf16.msra.mxu1 %v1105_v8  ;;  %v736_v7 = vld [vmem:[#allocation5 + $0x20] sm:$0xff] }
 0x26e   :  { %1107 = vmatprep.subr.bf16.mxu1 %v1209_v2  ;;  %v1117_v18 = vpack.c.bf16 %v737_v17, %v736_v7 }
 0x270   :  { %1118 = vmatpush3.bf16.msra.mxu0 %v1117_v18 }
 0x271   :  { %1109 = vmatpush3.bf16.msra.mxu1 %v1108_v10  ;;  %1119 = vmatprep.subr.bf16.mxu0 %v1209_v2 }
 0x274   :  { %1121 = vmatpush3.bf16.msra.mxu0 %v1120_v21 }
 0x275   :  { %1122 = vmatprep.subr.bf16.mxu0 %v1209_v2 }
 0x278   :  { %1124 = vmatpush3.bf16.msra.mxu0 %v1123_v24 }
 0x279   :  { %1125 = vmatprep.subr.bf16.mxu0 %v1209_v2 }
 0x27c   :  { %1127 = vmatpush3.bf16.msra.mxu0 %v1126_v27 }
 0x27d   :  { %1128 = vmatprep.subr.bf16.mxu0 %v1209_v2 }
 0x280   :  { %1130 = vmatpush3.bf16.msra.mxu0 %v1129_v35 }
 0x281   :  { %1131 = vmatprep.subr.bf16.mxu0 %v1209_v2  ;;  %v836_v2 = vld [vmem:[%s1436_s1] sm:$0xff] }
 0x282   :  { %v844_v47 = vmul.f32 %v891_v46, %v836_v2 }
 0x284   :  { %1133 = vmatpush3.bf16.msra.mxu0 %v1132_v38  ;;  %v846_v48 = vsel %vm845_vm10, %v844_v47, 0.0 }
 0x285   :  { %847 = vadd.xlane.f32.xlu0 %v846_v48 }
 0x312   :  { %v848_v56 = vpop.xlane.xlu0 %847 }
 0x335   :  { %v554_v28 = vpop.f32.mrb[6].mxu1 }
 0x336   :  { %v558_v29 = vadd.f32 %v554_v28, %v1380_v54  ;;  %v1008_v30 = vpop.f32.mrb[7].mxu1 }
 0x33f   :  { %v640_v31 = vpop.f32.mrb[8].mxu1 }
 0x340   :  { %v1021_v32 = vpop.f32.mrb[9].mxu1  ;;  %1031 = vmatmul.mubr.msk.f32.vlgmr.msra.gmra.mrb[10].mxu1 %vm251_vm5, %v640_v31 }
 0x413   :  { %v717_v40 = vpop.f32.mrb[10].mxu1 }
 0x414   :  { %v721_v41 = vadd.f32 %v717_v40, %v558_v29  ;;  %v1032_v42 = vpop.f32.mrb[11].mxu1 }
 0x416   :  { %v728_v43 = vadd.f32 %v888_v39, %v721_v41 }
 0x418   :  { %v730_v44 = vmul.f32 0.01, %v728_v43  ;;  %vm729_vm9 = vcmp.gt.f32.partialorder %v728_v43, 0.0 }
 0x41a   :  { %v731_v45 = vsel %vm729_vm9, %v728_v43, %v730_v44 }
 0x41b   :  { %1066 = vmatmul.mubr.f32.vlgmr.msra.gmra.mrb[4].mxu0 %v731_v45 }
 0x4ee   :  { %v821_v50 = vpop.f32.mrb[4].mxu0 }
 0x4ef   :  { %v822_v51 = vadd.f32 %v889_v49, %v821_v50  ;;  %v1067_v52 = vpop.f32.mrb[5].mxu0 }
 0x4f1   :  { %1150 = vtanh.f32 %v822_v51 }
 0x4fb   :  { %v1151_v54 = vpop.eup %1150 }
 0x4fc   :  { %v833_v55 = vmul.f32 %v1151_v54, %v890_v53 }
 0x4fe   :  { %834 = vadd.xlane.f32.xlu1 %v833_v55 }
 0x58b   :  { %v835_v58 = vpop.xlane.xlu1 %834 }
 0x58c   :  { %v849_v59 = vadd.f32 %v848_v56, %v835_v58 }
 0x58e   :  { %v857_v60 = vadd.f32 %v892_v57, %v849_v59 }
 0x590   :  { %v893_v61 = vmul.f32 -1.442695, %v857_v60 }
 0x592   :  { %1152 = vpow2.f32 %v893_v61 }
 0x59c   :  { %v1153_v62 = vpop.eup %1152 }
 0x59d   :  { %v861_v63 = vadd.f32 1.0, %v1153_v62 }
 0x59f   :  { %1154 = vrcp.f32 %v861_v63 }
 0x5a9   :  { %v1155_v0 = vpop.eup %1154 }
 0x5aa   :  { %866 = vperm.xlu0 %1149, %v1155_v0  }
 0x629   :  { %v867_v1 = vpop.permute.xlu0 %866 }
 0x62a   :  { %869 = vst [vmem:[%s1448_s13] sm:$0xff] %v867_v1 }
 0x62b   :  { %874 = vsyncpa [#allocation4], 1 }
 0x62c   :  { %875 = vsyncpa [#allocation6], 1 }

</bundles_post_ra>
